<compile_context>
chip_gen: v6e
topology: v6e:2x2x1
jax: 0.10.0
libtpu: 0.0.40
codegen_flags: <defaults>
</compile_context>

<pallas_src>
import jax
import jax.numpy as jnp
from jax.experimental import pallas as pl
from jax.experimental.pallas import tpu as pltpu

NEG_SLOPE = 0.2  # nn.LeakyReLU(0.2)


def _leaky_relu(x):
    return jnp.where(x > 0, x, NEG_SLOPE * x)


def _round_up(x, m):
    return ((x + m - 1) // m) * m


def _device_kind():
    try:
        return jax.devices()[0].device_kind.lower()
    except Exception:
        return ""


def _use_bf16_epilogue():
    # v5e's VPU/EUP have no bf16 support -> keep the elementwise epilogue f32
    # there; v6e/v7x benefit from packed-bf16 VALU work.
    return "v5" not in _device_kind()


def _const_spec(block_shape):
    """Resident (grid-invariant) operand: single-buffered if supported."""
    index_map = lambda i: (0, 0)
    if hasattr(pl, "Buffered"):
        try:
            return pl.BlockSpec(block_shape, index_map,
                                pipeline_mode=pl.Buffered(1))
        except TypeError:
            pass
    return pl.BlockSpec(block_shape, index_map)


def _make_kernel(bf16_epilogue):
    ep = jnp.bfloat16 if bf16_epilogue else jnp.float32

    def kernel(x_ref, w1_ref, b1_ref, w2_ref, b2_ref, w3_ref, b3_ref, o_ref):
        """Fused MLP forward for one lane-dense tile of rows.

        x_ref : (D, T) bf16   -- rows on lanes, features on sublanes
        w1_ref: (H, D) bf16   w2_ref: (H, H) bf16
        b1_ref/b2_ref/w3_ref: (H, 1) in the epilogue dtype
        b3_ref: (1,) f32 in SMEM
        o_ref : (1, T) f32    -- lane-dense output row
        """
        # Layer 1: (H, D) @ (D, T) -> (H, T), f32 accumulation on the MXU.
        h = jnp.dot(w1_ref[...], x_ref[...], preferred_element_type=jnp.float32)
        h = _leaky_relu(h.astype(ep) + b1_ref[...])
        # Layer 2: (H, H) @ (H, T) -> (H, T).
        h2 = jnp.dot(w2_ref[...], h.astype(jnp.bfloat16),
                     preferred_element_type=jnp.float32)
        h2 = h2.astype(ep) + b2_ref[...]
        # Layer 3 (Linear(H,1)) fused with layer-2 LeakyReLU:
        #   leaky_relu(h2) . w3 == h2 . where(h2 > 0, w3, 0.2*w3)
        # done as a VPU multiply + sublane (XLU) reduction; sum accumulates f32.
        w3 = w3_ref[...]
        w3_eff = jnp.where(h2 > 0, w3, NEG_SLOPE * w3)
        logits = jnp.sum((h2 * w3_eff).astype(jnp.float32),
                         axis=0, keepdims=True) + b3_ref[0]
        # Sigmoid via EUP exp + approximate reciprocal (~1e-3 rel error; use
        # approx=False if the output feeds BCE terms sensitive near 0/1).
        o_ref[...] = pl.reciprocal(1.0 + jnp.exp(-logits),
                                   approx=True).astype(o_ref.dtype)

    return kernel


def discriminator_forward(z_list, params, *, tile_m=None, bf16_epilogue=None):
    """Equivalent of Discriminator.forward(torch.cat(z, dim=-1)) -> (B, N, 1)."""
    w1, b1, w2, b2, w3, b3 = params
    z = jnp.concatenate(z_list, axis=-1)              # (B, N, D)
    B, N, D = z.shape
    H = w1.shape[1]
    M = B * N

    kind = _device_kind()
    if tile_m is None:
        # 512 on v7x (2 TCs, 64 MiB VMEM); 1024 on v5e/v6e (fewer grid steps).
        tile_m = 512 if "v7" in kind else 1024
    if bf16_epilogue is None:
        bf16_epilogue = _use_bf16_epilogue()
    ep_dtype = jnp.bfloat16 if bf16_epilogue else jnp.float32

    # Cast to bf16 BEFORE the transpose/pad so the wrapper copies move half the
    # bytes; then go to the transposed, lane-dense layout (D, M).
    xT = z.reshape(M, D).astype(jnp.bfloat16).T       # (D, M) bf16

    # Tile selection: lane dim 128-aligned, and >= 2 grid steps whenever
    # possible so the "parallel" axis can shard across both v7x TensorCores.
    m128 = _round_up(M, 128)
    if m128 <= 128:
        tile = 128
    else:
        tile = min(tile_m, _round_up(m128 // 2, 128))
    m_pad = _round_up(M, tile)
    if m_pad != M:
        xT = jnp.pad(xT, ((0, 0), (0, m_pad - M)))    # zero-filled pad rows
    grid = (m_pad // tile,)

    # bf16 operands for the MXU; biases / w3 in the epilogue dtype.
    w1t = w1.T.astype(jnp.bfloat16)                   # (H, D)
    w2t = w2.T.astype(jnp.bfloat16)                   # (H, H)
    b1c = b1.T.astype(ep_dtype)                       # (H, 1)
    b2c = b2.T.astype(ep_dtype)                       # (H, 1)
    w3c = w3.astype(ep_dtype)                         # (H, 1)
    b3c = b3.reshape(-1).astype(jnp.float32)          # (1,) -> SMEM scalar

    grid_spec = pl.GridSpec(
        grid=grid,
        in_specs=[
            pl.BlockSpec((D, tile), lambda i: (0, i)),       # x (row tile)
            _const_spec((H, D)),                             # w1^T (resident)
            _const_spec((H, 1)),                             # b1
            _const_spec((H, H)),                             # w2^T (resident)
            _const_spec((H, 1)),                             # b2
            _const_spec((H, 1)),                             # w3
            pl.BlockSpec(memory_space=pltpu.MemorySpace.SMEM),  # b3 scalar
        ],
        out_specs=pl.BlockSpec((1, tile), lambda i: (0, i)),
    )

    out = pl.pallas_call(
        _make_kernel(bf16_epilogue),
        out_shape=jax.ShapeDtypeStruct((1, m_pad), jnp.float32),
        grid_spec=grid_spec,
        compiler_params=pltpu.CompilerParams(
            dimension_semantics=("parallel",),
        ),
    )(xT, w1t, b1c, w2t, b2c, w3c, b3c)

    return out[0, :M].reshape(B, N, 1)


# ----------------------------- references ---------------------------------

def reference_forward_f32(z_list, params):
    """Pure-f32 reference matching the PyTorch module semantics."""
    w1, b1, w2, b2, w3, b3 = params
    z = jnp.concatenate(z_list, axis=-1)
    h = _leaky_relu(z @ w1 + b1[0])
    h = _leaky_relu(h @ w2 + b2[0])
    return jax.nn.sigmoid(h @ w3 + b3[0])


def reference_forward_matched(z_list, params, bf16_epilogue):
    """Reference mirroring the kernel's dtype choices."""
    w1, b1, w2, b2, w3, b3 = params
    bf = jnp.bfloat16
    ep = jnp.bfloat16 if bf16_epilogue else jnp.float32
    z = jnp.concatenate(z_list, axis=-1).astype(bf)
    h = jnp.dot(z, w1.astype(bf), preferred_element_type=jnp.float32)
    h = _leaky_relu(h.astype(ep) + b1.astype(ep))
    h = jnp.dot(h.astype(bf), w2.astype(bf), preferred_element_type=jnp.float32)
    h2 = h.astype(ep) + b2.astype(ep)
    w3v = w3[:, 0].astype(ep)
    w3_eff = jnp.where(h2 > 0, w3v, NEG_SLOPE * w3v)
    logits = jnp.sum((h2 * w3_eff).astype(jnp.float32),
                     axis=-1, keepdims=True) + b3[0, 0]
    return jax.nn.sigmoid(logits)


def init_params(key, d_in, hidden):
    """PyTorch-style Linear init: U(-1/sqrt(fan_in), 1/sqrt(fan_in))."""
    ks = jax.random.split(key, 6)

    def lin(kw, kb, fan_in, fan_out):
        bound = 1.0 / jnp.sqrt(fan_in)
        w = jax.random.uniform(kw, (fan_in, fan_out), jnp.float32, -bound, bound)
        b = jax.random.uniform(kb, (1, fan_out), jnp.float32, -bound, bound)
        return w, b

    w1, b1 = lin(ks[0], ks[1], d_in, hidden)
    w2, b2 = lin(ks[2], ks[3], hidden, hidden)
    w3, b3 = lin(ks[4], ks[5], hidden, 1)
    return (w1, b1, w2, b2, w3, b3)


if __name__ == "__main__":
    # TODO(synk): Discriminator.loss / permute_dims (torch.randperm per-row
    # gather + BCELoss) are host-RNG-driven glue outside the model-forward hot
    # path; only the forward MLP is implemented as a Pallas kernel.
    key = jax.random.PRNGKey(0)
    k_param, k_z, k_z2 = jax.random.split(key, 3)

    B, N, n_chunks, d_chunk, hidden = 2, 8, 4, 8, 64
    D = n_chunks * d_chunk  # 32

    z_keys = jax.random.split(k_z, n_chunks)
    z_list = [jax.random.normal(zk, (B, N, d_chunk), jnp.float32) for zk in z_keys]
    params = init_params(k_param, D, hidden)

    bf16_ep = _use_bf16_epilogue()

    out = jax.block_until_ready(discriminator_forward(z_list, params))
    assert out.shape == (B, N, 1), out.shape
    ref_matched = reference_forward_matched(z_list, params, bf16_ep)
    ref_f32 = reference_forward_f32(z_list, params)
    assert jnp.allclose(out, ref_matched, atol=1e-2, rtol=1e-2), \
        "mismatch vs dtype-matched reference"
    assert jnp.allclose(out, ref_f32, atol=5e-2, rtol=5e-2), \
        "mismatch vs f32 reference"

    # Exercise the multi-tile grid + row-padding path (M=900 -> 1024, 2 steps).
    B2, N2 = 3, 300
    z2_keys = jax.random.split(k_z2, n_chunks)
    z2_list = [jax.random.normal(zk, (B2, N2, d_chunk), jnp.float32) for zk in z2_keys]
    out2 = jax.block_until_ready(discriminator_forward(z2_list, params))
    assert out2.shape == (B2, N2, 1), out2.shape
    assert jnp.allclose(out2, reference_forward_matched(z2_list, params, bf16_ep),
                        atol=1e-2, rtol=1e-2), "mismatch vs reference (tiled path)"

    print("KERNEL_OK")
</pallas_src>

<mosaic_0001>
module attributes {stable_mosaic.version = 11 : i64} {
  func.func @kernel(%arg0: i32, %arg1: memref<32x128xbf16, #tpu.memory_space<vmem>>, %arg2: memref<64x32xbf16, #tpu.memory_space<vmem>>, %arg3: memref<64x1xbf16, #tpu.memory_space<vmem>>, %arg4: memref<64x64xbf16, #tpu.memory_space<vmem>>, %arg5: memref<64x1xbf16, #tpu.memory_space<vmem>>, %arg6: memref<64x1xbf16, #tpu.memory_space<vmem>>, %arg7: memref<1xf32, #tpu.memory_space<smem>>, %arg8: memref<1x128xf32, #tpu.memory_space<vmem>>) attributes {dimension_semantics = [#tpu.dimension_semantics<parallel>], iteration_bounds = array<i64: 1>, scalar_prefetch = 0 : i64, scratch_operands = 0 : i64, tpu.core_type = #tpu.core_type<tc>, window_params = [{transform_indices = @transform_0, window_bounds = array<i64: 32, 128>}, {pipeline_mode = #tpu.pipeline_mode<synchronous>, transform_indices = @transform_1, window_bounds = array<i64: 64, 32>}, {pipeline_mode = #tpu.pipeline_mode<synchronous>, transform_indices = @transform_2, window_bounds = array<i64: 64, 1>}, {pipeline_mode = #tpu.pipeline_mode<synchronous>, transform_indices = @transform_3, window_bounds = array<i64: 64, 64>}, {pipeline_mode = #tpu.pipeline_mode<synchronous>, transform_indices = @transform_4, window_bounds = array<i64: 64, 1>}, {pipeline_mode = #tpu.pipeline_mode<synchronous>, transform_indices = @transform_5, window_bounds = array<i64: 64, 1>}, {transform_indices = @transform_6, window_bounds = array<i64: 1>}, {transform_indices = @transform_7, window_bounds = array<i64: 1, 128>}]} {
    %c0 = arith.constant 0 : index
    %c0_0 = arith.constant 0 : index
    %0 = vector.load %arg2[%c0, %c0_0] : memref<64x32xbf16, #tpu.memory_space<vmem>>, vector<64x32xbf16>
    %c0_1 = arith.constant 0 : index
    %c0_2 = arith.constant 0 : index
    %1 = vector.load %arg1[%c0_1, %c0_2] : memref<32x128xbf16, #tpu.memory_space<vmem>>, vector<32x128xbf16>
    %cst = arith.constant dense<0.000000e+00> : vector<64x128xf32>
    %2 = tpu.matmul %0, %1, %cst {dimension_numbers = #tpu.dot_dimension_numbers<[1], [0], [0], [1], [0, 0, 1, 1], [], []>} : vector<64x32xbf16>, vector<32x128xbf16>, vector<64x128xf32> -> vector<64x128xf32>
    %3 = arith.truncf %2 : vector<64x128xf32> to vector<64x128xbf16>
    %c0_3 = arith.constant 0 : index
    %c0_4 = arith.constant 0 : index
    %4 = vector.load %arg3[%c0_3, %c0_4] : memref<64x1xbf16, #tpu.memory_space<vmem>>, vector<64x1xbf16>
    %5 = vector.broadcast %4 : vector<64x1xbf16> to vector<64x128xbf16>
    %6 = arith.addf %3, %5 : vector<64x128xbf16>
    %cst_5 = arith.constant 0.000000e+00 : bf16
    %7 = vector.broadcast %cst_5 : bf16 to vector<64x128xbf16>
    %8 = arith.cmpf ogt, %6, %7 : vector<64x128xbf16>
    %cst_6 = arith.constant 2.001950e-01 : bf16
    %9 = vector.broadcast %cst_6 : bf16 to vector<64x128xbf16>
    %10 = arith.mulf %9, %6 : vector<64x128xbf16>
    %11 = arith.select %8, %6, %10 : vector<64x128xi1>, vector<64x128xbf16>
    %c0_7 = arith.constant 0 : index
    %c0_8 = arith.constant 0 : index
    %12 = vector.load %arg4[%c0_7, %c0_8] : memref<64x64xbf16, #tpu.memory_space<vmem>>, vector<64x64xbf16>
    %cst_9 = arith.constant dense<0.000000e+00> : vector<64x128xf32>
    %13 = tpu.matmul %12, %11, %cst_9 {dimension_numbers = #tpu.dot_dimension_numbers<[1], [0], [0], [1], [0, 0, 1, 1], [], []>} : vector<64x64xbf16>, vector<64x128xbf16>, vector<64x128xf32> -> vector<64x128xf32>
    %14 = arith.truncf %13 : vector<64x128xf32> to vector<64x128xbf16>
    %c0_10 = arith.constant 0 : index
    %c0_11 = arith.constant 0 : index
    %15 = vector.load %arg5[%c0_10, %c0_11] : memref<64x1xbf16, #tpu.memory_space<vmem>>, vector<64x1xbf16>
    %16 = vector.broadcast %15 : vector<64x1xbf16> to vector<64x128xbf16>
    %17 = arith.addf %14, %16 : vector<64x128xbf16>
    %c0_12 = arith.constant 0 : index
    %c0_13 = arith.constant 0 : index
    %18 = vector.load %arg6[%c0_12, %c0_13] : memref<64x1xbf16, #tpu.memory_space<vmem>>, vector<64x1xbf16>
    %cst_14 = arith.constant 0.000000e+00 : bf16
    %19 = vector.broadcast %cst_14 : bf16 to vector<64x128xbf16>
    %20 = arith.cmpf ogt, %17, %19 : vector<64x128xbf16>
    %cst_15 = arith.constant 2.001950e-01 : bf16
    %21 = vector.broadcast %cst_15 : bf16 to vector<64x1xbf16>
    %22 = arith.mulf %21, %18 : vector<64x1xbf16>
    %23 = vector.shape_cast %18 : vector<64x1xbf16> to vector<64x1xbf16>
    %24 = vector.broadcast %23 : vector<64x1xbf16> to vector<64x128xbf16>
    %25 = vector.shape_cast %22 : vector<64x1xbf16> to vector<64x1xbf16>
    %26 = vector.broadcast %25 : vector<64x1xbf16> to vector<64x128xbf16>
    %27 = arith.select %20, %24, %26 : vector<64x128xi1>, vector<64x128xbf16>
    %28 = arith.mulf %17, %27 : vector<64x128xbf16>
    %29 = arith.extf %28 : vector<64x128xbf16> to vector<64x128xf32>
    %cst_16 = arith.constant dense<0.000000e+00> : vector<128xf32>
    %30 = vector.multi_reduction <add>, %29, %cst_16 [0] : vector<64x128xf32> to vector<128xf32>
    %31 = vector.shape_cast %30 : vector<128xf32> to vector<1x128xf32>
    %c0_17 = arith.constant 0 : index
    %32 = memref.load %arg7[%c0_17] : memref<1xf32, #tpu.memory_space<smem>>
    %33 = vector.broadcast %32 : f32 to vector<1x128xf32>
    %34 = arith.addf %31, %33 : vector<1x128xf32>
    %cst_18 = arith.constant 0.000000e+00 : f32
    %35 = vector.broadcast %cst_18 : f32 to vector<1x128xf32>
    %36 = arith.subf %35, %34 : vector<1x128xf32>
    %37 = math.exp %36 : vector<1x128xf32>
    %cst_19 = arith.constant 1.000000e+00 : f32
    %38 = vector.broadcast %cst_19 : f32 to vector<1x128xf32>
    %39 = arith.addf %38, %37 : vector<1x128xf32>
    %40 = tpu.reciprocal %39 {approx = true} : vector<1x128xf32> -> vector<1x128xf32>
    %c0_20 = arith.constant 0 : index
    %c0_21 = arith.constant 0 : index
    %41 = vector.load %arg8[%c0_20, %c0_21] : memref<1x128xf32, #tpu.memory_space<vmem>>, vector<1x128xf32>
    tpu.vector_store %arg8[%c0_20, %c0_21], %40 {strides = array<i32>} : memref<1x128xf32, #tpu.memory_space<vmem>>, vector<1x128xf32>,
    return
  }
  func.func @transform_0(%arg0: i32) -> (i32, i32) {
    %c0_i32 = arith.constant 0 : i32
    %c0_i32_0 = arith.constant 0 : i32
    return %c0_i32, %arg0 : i32, i32
  }
  func.func @transform_1(%arg0: i32) -> (i32, i32) {
    %c0_i32 = arith.constant 0 : i32
    %c0_i32_0 = arith.constant 0 : i32
    %c0_i32_1 = arith.constant 0 : i32
    return %c0_i32, %c0_i32_0 : i32, i32
  }
  func.func @transform_2(%arg0: i32) -> (i32, i32) {
    %c0_i32 = arith.constant 0 : i32
    %c0_i32_0 = arith.constant 0 : i32
    %c0_i32_1 = arith.constant 0 : i32
    return %c0_i32, %c0_i32_0 : i32, i32
  }
  func.func @transform_3(%arg0: i32) -> (i32, i32) {
    %c0_i32 = arith.constant 0 : i32
    %c0_i32_0 = arith.constant 0 : i32
    %c0_i32_1 = arith.constant 0 : i32
    return %c0_i32, %c0_i32_0 : i32, i32
  }
  func.func @transform_4(%arg0: i32) -> (i32, i32) {
    %c0_i32 = arith.constant 0 : i32
    %c0_i32_0 = arith.constant 0 : i32
    %c0_i32_1 = arith.constant 0 : i32
    return %c0_i32, %c0_i32_0 : i32, i32
  }
  func.func @transform_5(%arg0: i32) -> (i32, i32) {
    %c0_i32 = arith.constant 0 : i32
    %c0_i32_0 = arith.constant 0 : i32
    %c0_i32_1 = arith.constant 0 : i32
    return %c0_i32, %c0_i32_0 : i32, i32
  }
  func.func @transform_6(%arg0: i32) -> i32 {
    %c0_i32 = arith.constant 0 : i32
    %c0_i32_0 = arith.constant 0 : i32
    return %c0_i32 : i32
  }
  func.func @transform_7(%arg0: i32) -> (i32, i32) {
    %c0_i32 = arith.constant 0 : i32
    %c0_i32_0 = arith.constant 0 : i32
    return %c0_i32, %arg0 : i32, i32
  }
}

</mosaic_0001>

<bundles_post_ra>
// kernel: tpu_custom_call.1
= control target key start
LH: loop header
LB: loop body
LE: loop exit
PB: predicated region body
PF: predicated region fallthrough
CT: control target
= control target key end

     0   :  { %vm74_vm0 = vcmask 261120   ;;  %v971_v3 = vmov 0   ;;  %s1176_s0 = inlined_call_operand.vmem [shape: bf16[32,128], index: 0, kind: input, shape index: {}]   ;;  %s1177_s1 = inlined_call_operand.vmem [shape: bf16[64,32], index: 1, kind: input, shape index: {}]   ;;  %s1178_s2 = inlined_call_operand.vmem [shape: bf16[64,1], index: 2, kind: input, shape index: {}]   ;;  %s1179_s3 = inlined_call_operand.vmem [shape: bf16[64,64], index: 3, kind: input, shape index: {}]   ;;  %s1180_s4 = inlined_call_operand.vmem [shape: bf16[64,1], index: 4, kind: input, shape index: {}]   ;;  %s1181_s5 = inlined_call_operand.vmem [shape: bf16[64,1], index: 5, kind: input, shape index: {}]   ;;  %s1182_s6 = inlined_call_operand.<no memory space> [shape: f32[1], index: 6, kind: input, shape index: {}]   ;;  %s1183_s7 = inlined_call_operand.hbm [shape: f32[1,128], index: 7, kind: output, shape index: {}]  }
   0x1   :  { %v935_v0 = vld [vmem:[%s1176_s0 + $0x8] sm:$0xff]   ;;  %v936_v1 = vld [vmem:[%s1176_s0] sm:$0xff]   ;;  %934 = vset.pattern.permute.xlu1 %v971_v3  ;;  %933 = vset.pattern.permute.xlu0 %v971_v3  ;;  %v162_v5 = vld [vmem:[%s1178_s2 + $0x18] sm:$0xf] }
   0x2   :  { %902 = vmatprep.subr.bf16.mxu0 %v935_v0  ;;  %v937_v2 = vld [vmem:[%s1177_s1] sm:$0xff]   ;;  %v938_v4 = vld [vmem:[%s1177_s1 + $0x8] sm:$0xff]   ;;  %v160_v6 = vld [vmem:[%s1178_s2 + $0x10] sm:$0xf]  ;;  %238 = vperm.xlu0 %933, %v162_v5  }
   0x3   :  { %903 = vmatpush3.bf16.msra.mxu0 %v935_v0  ;;  %906 = vmatprep.mubr.msk.bf16.mxu0 %vm74_vm0, %v937_v2  ;;  %v939_v7 = vld [vmem:[%s1177_s1 + $0x10] sm:$0xff]   ;;  %v163_v8 = vld [vmem:[%s1178_s2 + $0x1c] sm:$0xf]  ;;  %v158_v10 = vld [vmem:[%s1178_s2 + $0x8] sm:$0xf] }
   0x4   :  { %904 = vmatprep.subr.bf16.mxu0 %v936_v1  ;;  %214 = vperm.xlu1 %934, %v160_v6   ;;  %v161_v9 = vld [vmem:[%s1178_s2 + $0x14] sm:$0xf]  ;;  %v159_v11 = vld [vmem:[%s1178_s2 + $0xc] sm:$0xf]  ;;  %v940_v12 = vld [vmem:[%s1177_s1 + $0x18] sm:$0xff]  }
   0x5   :  { %v157_v13 = vld [vmem:[%s1178_s2 + $0x4] sm:$0xf]  ;;  %v156_v14 = vld [vmem:[%s1178_s2] sm:$0xf] }
   0x6   :  { %250 = vperm.xlu0 %933, %v163_v8  }
   0x7   :  { %905 = vmatpush3.bf16.msra.mxu0 %v936_v1 }
   0x8   :  { %226 = vperm.xlu1 %934, %v161_v9  }
   0xa   :  { %907 = vmatmul.mubr.msk.bf16.vlgmr.msra.gmra.mxu0 %vm74_vm0, %v938_v4  ;;  %190 = vperm.xlu0 %933, %v158_v10  }
   0xb   :  { %910 = vmatprep.mubr.msk.bf16.mxu0 %vm74_vm0, %v939_v7 }
   0xc   :  { %202 = vperm.xlu1 %934, %v159_v11  }
   0xe   :  { %166 = vperm.xlu0 %933, %v156_v14  }
  0x12   :  { %911 = vmatmul.mubr.msk.bf16.gmra.mxu0 %vm74_vm0, %v940_v12 }
  0x13   :  { %13 = vsyncpa [#allocation4], 0  ;;  %178 = vperm.xlu1 %934, %v157_v13   ;;  %v410_v15 = vld [vmem:[%s1180_s4] sm:$0xf]  ;;  %v411_v16 = vld [vmem:[%s1180_s4 + $0x4] sm:$0xf]  ;;  %v172_v44 = vlaneseq }
  0x14   :  { %420 = vperm.xlu0 %933, %v410_v15   ;;  %v412_v17 = vld [vmem:[%s1180_s4 + $0x8] sm:$0xf]  ;;  %v413_v18 = vld [vmem:[%s1180_s4 + $0xc] sm:$0xf]  ;;  %v542_v19 = vld [vmem:[%s1181_s5] sm:$0xf] }
  0x15   :  { %v543_v20 = vld [vmem:[%s1181_s5 + $0x4] sm:$0xf]  ;;  %v554_v21 = vmul.bf16 1045249613, %v542_v19  ;;  %v544_v23 = vld [vmem:[%s1181_s5 + $0x8] sm:$0xf] }
  0x16   :  { %v555_v22 = vmul.bf16 1045249613, %v543_v20  ;;  %v545_v24 = vld [vmem:[%s1181_s5 + $0xc] sm:$0xf]  ;;  %v556_v25 = vmul.bf16 1045249613, %v544_v23 }
  0x17   :  { %432 = vperm.xlu1 %934, %v411_v16   ;;  %v557_v26 = vmul.bf16 1045249613, %v545_v24  ;;  %v414_v27 = vld [vmem:[%s1180_s4 + $0x10] sm:$0xf]  ;;  %v415_v28 = vld [vmem:[%s1180_s4 + $0x14] sm:$0xf] }
  0x18   :  { %444 = vperm.xlu0 %933, %v412_v17   ;;  %v546_v29 = vld [vmem:[%s1181_s5 + $0x10] sm:$0xf]  ;;  %v547_v30 = vld [vmem:[%s1181_s5 + $0x14] sm:$0xf]  ;;  %v416_v33 = vld [vmem:[%s1180_s4 + $0x18] sm:$0xf] }
  0x19   :  { %v558_v31 = vmul.bf16 1045249613, %v546_v29  ;;  %v559_v32 = vmul.bf16 1045249613, %v547_v30  ;;  %v417_v34 = vld [vmem:[%s1180_s4 + $0x1c] sm:$0xf] }
  0x1a   :  { %v548_v35 = vld [vmem:[%s1181_s5 + $0x18] sm:$0xf]  ;;  %v549_v36 = vld [vmem:[%s1181_s5 + $0x1c] sm:$0xf]  ;;  %v941_v39 = vld [vmem:[%s1179_s3] sm:$0xff]   ;;  %vm328_vm1 = vcmask 523264  }
  0x1b   :  { %456 = vperm.xlu1 %934, %v413_v18   ;;  %v560_v37 = vmul.bf16 1045249613, %v548_v35  ;;  %v561_v38 = vmul.bf16 1045249613, %v549_v36  ;;  %922 = vmatprep.mubr.msk.bf16.mxu1 %vm328_vm1, %v941_v39  ;;  %v972_v42 = vmov 839922192  }
  0x1c   :  { %564 = vperm.xlu0 %933, %v542_v19   ;;  %v170_v43 = vunpack.c.l.s4 %v972_v42  ;;  %v173_v48 = vshrl.u32 %v172_v44, 7  ;;  %s973_s15 = smov [#allocation3]  }
  0x1d   :  { %s846_s16 = sshll.u32 %s973_s15, 4  ;;  %s847_s16 = int_to_ptr.vmem [resolvable:$true] %s846_s16 }
  0x1e   :  { %v171_v47 = vunpack.c.0.s8 %v170_v43  ;;  %s949_s17 = scalar_lea.vmem %s847_s16, 16  ;;  %s953_s18 = scalar_lea.vmem %s847_s16, 32 }
  0x1f   :  { %576 = vperm.xlu1 %934, %v543_v20   ;;  %p950_p0 = scmp.ne.s32.totalorder %s847_s16, %s949_s17  ;;  %p954_p1 = scmp.lt.s32.totalorder %s847_s16, %s847_s16 }
  0x20   :  { %660 = vperm.xlu0 %933, %v554_v21   ;;  %v1112_v51 = vsub.s32 %v171_v47, %v173_v48  ;;  %p955_p2 = scmp.lt.s32.totalorder %s953_s18, %s949_s17 }
  0x22   :  { %p956_p3 = por %p955_p2, %p954_p1 }
  0x23   :  { %672 = vperm.xlu1 %934, %v555_v22  }
  0x24   :  { %588 = vperm.xlu0 %933, %v544_v23   ;;  %p957_p4 = pnand %p956_p3, %p950_p0 }
  0x27   :  { %600 = vperm.xlu1 %934, %v545_v24  }
  0x28   :  { %684 = vperm.xlu0 %933, %v556_v25  }
  0x2b   :  { %696 = vperm.xlu1 %934, %v557_v26   ;;  %v942_v26 = vld [vmem:[%s1179_s3 + $0x8] sm:$0xff]  }
  0x2c   :  { %468 = vperm.xlu0 %933, %v414_v27   ;;  %v943_v27 = vld [vmem:[%s1179_s3 + $0x10] sm:$0xff]  }
  0x2f   :  { %480 = vperm.xlu1 %934, %v415_v28   ;;  %v944_v28 = vld [vmem:[%s1179_s3 + $0x18] sm:$0xff]  }
  0x30   :  { %612 = vperm.xlu0 %933, %v546_v29  }
  0x33   :  { %624 = vperm.xlu1 %934, %v547_v30  }
  0x34   :  { %708 = vperm.xlu0 %933, %v558_v31  }
  0x37   :  { %720 = vperm.xlu1 %934, %v559_v32  }
  0x38   :  { %492 = vperm.xlu0 %933, %v416_v33  }
  0x3b   :  { %504 = vperm.xlu1 %934, %v417_v34  }
  0x3c   :  { %636 = vperm.xlu0 %933, %v548_v35  }
  0x3f   :  { %648 = vperm.xlu1 %934, %v549_v36  }
  0x40   :  { %732 = vperm.xlu0 %933, %v560_v37  }
  0x43   :  { %744 = vperm.xlu1 %934, %v561_v38  }
  0x7d   :  { %v239_v40 = vpop.permute.xlu0 %238 }
  0x7e   :  { %v247_v59 = vrot.slane %v239_v40, %v1112_v51 }
  0x7f   :  { %v215_v41 = vpop.permute.xlu1 %214 }
  0x80   :  { %v223_v62 = vrot.slane %v215_v41, %v1112_v51 }
  0x81   :  { %v251_v45 = vpop.permute.xlu0 %250 }
  0x82   :  { %v259_v60 = vrot.slane %v251_v45, %v1112_v51 }
  0x83   :  { %v227_v46 = vpop.permute.xlu1 %226 }
  0x84   :  { %v235_v63 = vrot.slane %v227_v46, %v1112_v51  ;;  %v867_v7 = vcombine.low %v247_v59, %v259_v60 }
  0x85   :  { %v191_v54 = vpop.permute.xlu0 %190 }
  0x86   :  { %v199_v57 = vrot.slane %v191_v54, %v1112_v51  ;;  %v866_v10 = vcombine.low %v223_v62, %v235_v63 }
  0x87   :  { %v203_v53 = vpop.permute.xlu1 %202 }
  0x88   :  { %v211_v56 = vrot.slane %v203_v53, %v1112_v51 }
  0x89   :  { %v167_v1 = vpop.permute.xlu0 %166 }
  0x8a   :  { %v865_v2 = vcombine.low %v199_v57, %v211_v56  ;;  %v175_v4 = vrot.slane %v167_v1, %v1112_v51 }
  0x8e   :  { %v179_v0 = vpop.permute.xlu1 %178 }
  0x8f   :  { %v187_v3 = vrot.slane %v179_v0, %v1112_v51  ;;  %v421_v30 = vpop.permute.xlu0 %420 }
  0x91   :  { %v864_v13 = vcombine.low %v175_v4, %v187_v3 }
  0x92   :  { %v433_v29 = vpop.permute.xlu1 %432 }
  0x93   :  { %v445_v32 = vpop.permute.xlu0 %444 }
  0x94   :  { %v453_v54 = vrot.slane %v445_v32, %v1112_v51 }
  0x96   :  { %v457_v31 = vpop.permute.xlu1 %456 }
  0x97   :  { %v565_v34 = vpop.permute.xlu0 %564  ;;  %v465_v53 = vrot.slane %v457_v31, %v1112_v51 }
  0x98   :  { %v573_v3 = vrot.slane %v565_v34, %v1112_v51 }
  0x99   :  { %v877_v62 = vcombine.low %v453_v54, %v465_v53 }
  0x9a   :  { %v577_v33 = vpop.permute.xlu1 %576 }
  0x9b   :  { %v661_v36 = vpop.permute.xlu0 %660 }
  0x9e   :  { %v673_v35 = vpop.permute.xlu1 %672 }
  0x9f   :  { %v589_v38 = vpop.permute.xlu0 %588  ;;  %v681_v4 = vrot.slane %v673_v35, %v1112_v51 }
  0xa0   :  { %v597_v57 = vrot.slane %v589_v38, %v1112_v51 }
  0xa2   :  { %v601_v37 = vpop.permute.xlu1 %600 }
  0xa3   :  { %v685_v40 = vpop.permute.xlu0 %684  ;;  %v609_v56 = vrot.slane %v601_v37, %v1112_v51 }
  0xa4   :  { %v693_v59 = vrot.slane %v685_v40, %v1112_v51 }
  0xa6   :  { %v697_v39 = vpop.permute.xlu1 %696 }
  0xa7   :  { %v469_v42 = vpop.permute.xlu0 %468 }
  0xaa   :  { %v481_v41 = vpop.permute.xlu1 %480 }
  0xab   :  { %v1136_v44 = vpop.permute.xlu0 %612 }
  0xae   :  { %v1134_v43 = vpop.permute.xlu1 %624 }
  0xaf   :  { %v1140_v46 = vpop.permute.xlu0 %708 }
  0xb2   :  { %v1138_v45 = vpop.permute.xlu1 %720 }
  0xb3   :  { %v493_v48 = vpop.permute.xlu0 %492 }
  0xb6   :  { %v505_v47 = vpop.permute.xlu1 %504 }
  0xb7   :  { %v637_v0 = vpop.permute.xlu0 %636 }
  0xb8   :  { %v645_v35 = vrot.slane %v637_v0, %v1112_v51 }
  0xba   :  { %v649_v63 = vpop.permute.xlu1 %648 }
  0xbb   :  { %v657_v34 = vrot.slane %v649_v63, %v1112_v51 }
  0xca   :  { %v908_v49 = vpop.f32.mrf.mxu0 }
  0xcc   :  { %v121_v50 = vpop.f32.mrf.mxu0 }
  0xce   :  { %v909_v52 = vpop.f32.mrf.mxu0 }
  0xcf   :  { %v153_v5 = vpack.c.bf16 %v909_v52, %v908_v49  ;;  %v429_v52 = vrot.slane %v421_v30, %v1112_v51 }
  0xd0   :  { %v124_v55 = vpop.f32.mrf.mxu0 }
  0xd1   :  { %v285_v14 = vadd.bf16 %v865_v2, %v153_v5  ;;  %v152_v15 = vpack.c.bf16 %v124_v55, %v121_v50  ;;  %v441_v50 = vrot.slane %v433_v29, %v1112_v51  ;;  %v585_v2 = vrot.slane %v577_v33, %v1112_v51 }
  0xd2   :  { %v912_v58 = vpop.f32.mrf.mxu0  ;;  %v669_v5 = vrot.slane %v661_v36, %v1112_v51 }
  0xd3   :  { %v284_v20 = vadd.bf16 %v864_v13, %v152_v15  ;;  %v293_v22 = vmul.bf16 1045249613, %v285_v14  ;;  %vm289_vm4 = vcmp.gt.bf16.partialorder %v285_v14, 0  ;;  %v501_v15 = vrot.slane %v493_v48, %v1112_v51 }
  0xd4   :  { %v137_v61 = vpop.f32.mrf.mxu0  ;;  %v883_v48 = vcombine.low %v645_v35, %v657_v34 }
  0xd5   :  { %v297_v23 = vsel %vm289_vm4, %v285_v14, %v293_v22  ;;  %v292_v24 = vmul.bf16 1045249613, %v284_v20  ;;  %vm288_vm5 = vcmp.gt.bf16.partialorder %v284_v20, 0  ;;  %v513_v14 = vrot.slane %v505_v47, %v1112_v51 }
  0xd6   :  { %v913_v6 = vpop.f32.mrf.mxu0  ;;  %v621_v22 = vrot.slane %v1136_v44, %v1112_v51 }
  0xd7   :  { %v155_v8 = vpack.c.bf16 %v913_v6, %v912_v58  ;;  %v296_v25 = vsel %vm288_vm5, %v284_v20, %v292_v24  ;;  %v705_v58 = vrot.slane %v697_v39, %v1112_v51  ;;  %v733_v24 = vpop.permute.xlu0 %732  ;;  %v879_v30 = vcombine.low %v501_v15, %v513_v14 }
  0xd8   :  { %v140_v9 = vpop.f32.mrf.mxu0  ;;  %v741_v37 = vrot.slane %v733_v24, %v1112_v51 }
  0xd9   :  { %v287_v11 = vadd.bf16 %v867_v7, %v155_v8  ;;  %v154_v12 = vpack.c.bf16 %v140_v9, %v137_v61  ;;  %v876_v61 = vcombine.low %v429_v52, %v441_v50  ;;  %v489_v7 = vrot.slane %v481_v41, %v1112_v51 }
  0xda   :  { %v477_v8 = vrot.slane %v469_v42, %v1112_v51 }
  0xdb   :  { %v286_v16 = vadd.bf16 %v866_v10, %v154_v12  ;;  %vm291_vm2 = vcmp.gt.bf16.partialorder %v287_v11, 0  ;;  %v295_v17 = vmul.bf16 1045249613, %v287_v11  ;;  %v885_v12 = vcombine.low %v693_v59, %v705_v58 }
  0xdd   :  { %v299_v18 = vsel %vm291_vm2, %v287_v11, %v295_v17  ;;  %vm290_vm3 = vcmp.gt.bf16.partialorder %v286_v16, 0  ;;  %v294_v19 = vmul.bf16 1045249613, %v286_v16  ;;  %v881_v11 = vcombine.low %v597_v57, %v609_v56 }
  0xde   :  { %914 = vmatprep.subr.bf16.mxu1 %v299_v18  ;;  %v880_v17 = vcombine.low %v573_v3, %v585_v2 }
  0xdf   :  { %915 = vmatpush3.bf16.msra.mxu1 %v299_v18  ;;  %v298_v21 = vsel %vm290_vm3, %v286_v16, %v294_v19  ;;  %v884_v18 = vcombine.low %v669_v5, %v681_v4 }
  0xe0   :  { %916 = vmatprep.subr.bf16.mxu1 %v298_v21 }
  0xe3   :  { %917 = vmatpush3.bf16.msra.mxu1 %v298_v21  ;;  %v878_v21 = vcombine.low %v477_v8, %v489_v7 }
  0xe4   :  { %918 = vmatprep.subr.bf16.mxu1 %v297_v23 }
  0xe7   :  { %919 = vmatpush3.bf16.msra.mxu1 %v297_v23  ;;  %v745_v23 = vpop.permute.xlu1 %744 }
  0xe8   :  { %920 = vmatprep.subr.bf16.mxu1 %v296_v25  ;;  %v753_v36 = vrot.slane %v745_v23, %v1112_v51 }
  0xeb   :  { %921 = vmatpush3.bf16.msra.mxu1 %v296_v25  ;;  %v633_v25 = vrot.slane %v1134_v43, %v1112_v51 }
  0xee   :  { %923 = vmatmul.mubr.msk.bf16.vlgmr.msra.gmra.mxu1 %vm328_vm1, %v942_v26  ;;  %v729_v26 = vrot.slane %v1138_v45, %v1112_v51 }
  0xef   :  { %926 = vmatprep.mubr.msk.bf16.mxu1 %vm328_vm1, %v943_v27  ;;  %v717_v27 = vrot.slane %v1140_v46, %v1112_v51  ;;  %v882_v46 = vcombine.low %v621_v22, %v633_v25 }
  0xf1   :  { %v886_v47 = vcombine.low %v717_v27, %v729_v26 }
  0xf6   :  { %927 = vmatmul.mubr.msk.bf16.gmra.mxu1 %vm328_vm1, %v944_v28 }
 0x1ae   :  { %v924_v49 = vpop.f32.mrf.mxu1 }
 0x1b0   :  { %v375_v55 = vpop.f32.mrf.mxu1 }
 0x1b2   :  { %v925_v60 = vpop.f32.mrf.mxu1 }
 0x1b3   :  { %v407_v1 = vpack.c.bf16 %v925_v60, %v924_v49  ;;  %v887_v49 = vcombine.low %v741_v37, %v753_v36 }
 0x1b4   :  { %v378_v6 = vpop.f32.mrf.mxu1 }
 0x1b5   :  { %v539_v9 = vadd.bf16 %v877_v62, %v407_v1  ;;  %v406_v10 = vpack.c.bf16 %v378_v6, %v375_v55  ;;  %v832_v6 = vstv %s1182_s6 }
 0x1b6   :  { %v928_v13 = vpop.f32.mrf.mxu1 }
 0x1b7   :  { %vm551_vm6 = vcmp.gt.bf16.partialorder %v539_v9, 0  ;;  %v538_v16 = vadd.bf16 %v876_v61, %v406_v10 }
 0x1b8   :  { %v803_v19 = vsel %vm551_vm6, %v881_v11, %v885_v12  ;;  %v391_v20 = vpop.f32.mrf.mxu1 }
 0x1b9   :  { %vm550_vm7 = vcmp.gt.bf16.partialorder %v538_v16, 0  ;;  %v807_v31 = vmul.bf16 %v803_v19, %v539_v9 }
 0x1ba   :  { %v802_v28 = vsel %vm550_vm7, %v880_v17, %v884_v18  ;;  %v929_v29 = vpop.f32.mrf.mxu1 }
 0x1bb   :  { %v806_v32 = vmul.bf16 %v802_v28, %v538_v16  ;;  %v409_v33 = vpack.c.bf16 %v929_v29, %v928_v13  ;;  %v812_v43 = vunpack.c.l.bf16 %v807_v31  ;;  %v813_v54 = vunpack.c.h.bf16 %v807_v31 }
 0x1bc   :  { %v394_v38 = vpop.f32.mrf.mxu1 }
 0x1bd   :  { %v810_v39 = vunpack.c.l.bf16 %v806_v32  ;;  %v811_v40 = vunpack.c.h.bf16 %v806_v32  ;;  %v541_v41 = vadd.bf16 %v879_v30, %v409_v33  ;;  %v408_v42 = vpack.c.bf16 %v394_v38, %v391_v20 }
 0x1bf   :  { %v818_v44 = vadd.f32 %v811_v40, %v810_v39  ;;  %vm553_vm8 = vcmp.gt.bf16.partialorder %v541_v41, 0  ;;  %v540_v45 = vadd.bf16 %v878_v21, %v408_v42 }
 0x1c0   :  { %v805_v52 = vsel %vm553_vm8, %v883_v48, %v887_v49 }
 0x1c1   :  { %v819_v50 = vadd.f32 %v818_v44, %v812_v43  ;;  %vm552_vm9 = vcmp.gt.bf16.partialorder %v540_v45, 0  ;;  %v809_v51 = vmul.bf16 %v805_v52, %v541_v41 }
 0x1c2   :  { %v804_v53 = vsel %vm552_vm9, %v882_v46, %v886_v47 }
 0x1c3   :  { %v808_v55 = vmul.bf16 %v804_v53, %v540_v45  ;;  %v820_v57 = vadd.f32 %v819_v50, %v813_v54  ;;  %v816_v60 = vunpack.c.l.bf16 %v809_v51  ;;  %v817_v62 = vunpack.c.h.bf16 %v809_v51 }
 0x1c5   :  { %v814_v56 = vunpack.c.l.bf16 %v808_v55  ;;  %v815_v58 = vunpack.c.h.bf16 %v808_v55 }
 0x1c7   :  { %v821_v59 = vadd.f32 %v820_v57, %v814_v56 }
 0x1c9   :  { %v822_v61 = vadd.f32 %v821_v59, %v815_v58 }
 0x1cb   :  { %v823_v63 = vadd.f32 %v822_v61, %v816_v60 }
 0x1cd   :  { %v824_v0 = vadd.f32 %v823_v63, %v817_v62 }
 0x1cf   :  { %v825_v1 = vrot.slane %v824_v0, 4 }
 0x1d1   :  { %v826_v2 = vadd.f32 %v825_v1, %v824_v0 }
 0x1d3   :  { %v827_v3 = vrot.slane %v826_v2, 2 }
 0x1d5   :  { %v828_v4 = vadd.f32 %v827_v3, %v826_v2 }
 0x1d7   :  { %v829_v5 = vrot.slane %v828_v4, 1 }
 0x1d9   :  { %v830_v7 = vadd.f32 %v829_v5, %v828_v4 }
 0x1db   :  { %v833_v8 = vadd.f32 %v832_v6, %v830_v7 }
 0x1dd   :  { %v834_v9 = vsub.f32 0.0, %v833_v8 }
 0x1df   :  { %v835_v10 = vmul.f32 1.442695, %v834_v9 }
 0x1e1   :  { %945 = vpow2.f32 %v835_v10 }
 0x1ee   :  { %v946_v11 = vpop.eup %945 }
 0x1ef   :  { %v837_v12 = vadd.f32 1.0, %v946_v11 }
 0x1f1   :  { %947 = vrcp.f32 %v837_v12 }
 0x1fe   :  { %v948_v13 = vpop.eup %947 }
 0x1ff   :  { %839 = vst [vmem:[#allocation3] sm:$0x1] %v948_v13 }
 0x200   :  { %960 = shalt.err (!%p957_p4)
}
 0x201   :  { %849 = dma.vmem_to_hbm [thread:$0]  %s847_s16, 16, %s1183_s7, [#allocation4]  }
 0x202   :  { %969 = dma.done.wait [#allocation4], 16  }
 0x203   :  { %970 = vsyncadd [#allocation4], 4294967280 }
 0x204   :  { %853 = vsyncpa [#allocation4], 1 }

</bundles_post_ra>
